<compile_context>
chip_gen: v5e
topology: v5e:2x2
jax: 0.10.0
libtpu: 0.0.40
codegen_flags: <defaults>
</compile_context>

<pallas_src>
import functools

import jax
import jax.numpy as jnp
from jax.experimental import pallas as pl
from jax.experimental.pallas import tpu as pltpu


def _cdiv(a, b):
    return (a + b - 1) // b


def _round_up(n, m):
    return _cdiv(n, m) * m


def mlp_kernel(x_ref, w1_ref, b1_ref, w2_ref, b2_ref, w3_ref, b3_ref, o_ref):
    # Layer 1: Linear + ReLU   (batch on sublane axis, features on lane axis)
    h1 = jnp.dot(x_ref[...], w1_ref[...], preferred_element_type=jnp.float32)
    h1 = jnp.maximum(h1 + b1_ref[...], 0.0)
    # Layer 2: Linear + ReLU
    h2 = jnp.dot(h1, w2_ref[...], preferred_element_type=jnp.float32)
    h2 = jnp.maximum(h2 + b2_ref[...], 0.0)
    # Output layer: Linear, computed transposed so the result has the batch on
    # the lane axis -> lane-dense (unmasked) stores.
    #   w3: (out_size, h2_dim), h2: (bt, h2_dim); contract feature dims -> (out_size, bt)
    out_t = jax.lax.dot_general(
        w3_ref[...], h2,
        dimension_numbers=(((1,), (1,)), ((), ())),
        preferred_element_type=jnp.float32,
    )
    o_ref[...] = (out_t + b3_ref[...]).astype(o_ref.dtype)


@functools.partial(jax.jit, static_argnames=("batch_tile",))
def net_forward(x, params, *, batch_tile=4096):
    """x: [B, input_size] float32.

    params:
      w1: [in, h1],  b1: [1, h1]
      w2: [h1, h2],  b2: [1, h2]
      w3: [out, h2], b3: [out, 1]   (PyTorch-style [out, in] layout for the head)
    Returns [B, out] float32.
    """
    B, in_size = x.shape
    h1_dim = params["w1"].shape[1]
    h2_dim = params["w2"].shape[1]
    out_size = params["w3"].shape[0]

    # Large lane-aligned batch tile; keep >=2 grid steps when batch allows so
    # v7x's two TensorCores both get work. Pad batch to a tile multiple.
    bt = min(batch_tile, max(128, _round_up(_cdiv(B, 2), 128)))
    B_pad = _round_up(B, bt)
    if B_pad != B:
        x = jnp.pad(x, ((0, B_pad - B), (0, 0)))
    grid = (B_pad // bt,)

    flops = 2 * B_pad * (in_size * h1_dim + h1_dim * h2_dim + h2_dim * out_size)
    weight_bytes = 4 * (in_size * h1_dim + h1_dim * h2_dim + h2_dim * out_size
                        + h1_dim + h2_dim + out_size)
    bytes_accessed = 4 * (B_pad * in_size + B_pad * out_size) + weight_bytes

    # Weights/biases: constant index_map -> fetched once, stay VMEM-resident.
    out_t = pl.pallas_call(
        mlp_kernel,
        out_shape=jax.ShapeDtypeStruct((out_size, B_pad), jnp.float32),
        grid=grid,
        in_specs=[
            pl.BlockSpec((bt, in_size), lambda i: (i, 0)),        # x tile (streams)
            pl.BlockSpec((in_size, h1_dim), lambda i: (0, 0)),    # w1
            pl.BlockSpec((1, h1_dim), lambda i: (0, 0)),          # b1
            pl.BlockSpec((h1_dim, h2_dim), lambda i: (0, 0)),     # w2
            pl.BlockSpec((1, h2_dim), lambda i: (0, 0)),          # b2
            pl.BlockSpec((out_size, h2_dim), lambda i: (0, 0)),   # w3 (out, h2)
            pl.BlockSpec((out_size, 1), lambda i: (0, 0)),        # b3 (out, 1)
        ],
        out_specs=pl.BlockSpec((out_size, bt), lambda i: (0, i)),  # lane-dense
        compiler_params=pltpu.CompilerParams(
            dimension_semantics=("parallel",),
        ),
        cost_estimate=pl.CostEstimate(
            flops=flops, transcendentals=0, bytes_accessed=bytes_accessed),
    )(x, params["w1"], params["b1"], params["w2"], params["b2"],
      params["w3"], params["b3"])

    # (out_size, B_pad) -> (B, out_size); for out_size=1 this is a cheap reshape.
    return out_t[:, :B].T


def init_params(key, input_size, hidden_sizes=(64, 64), output_size=1):
    sizes = [input_size] + list(hidden_sizes) + [output_size]
    n_layers = len(sizes) - 1
    params = {}
    keys = jax.random.split(key, 2 * n_layers)
    for li in range(n_layers):
        fan_in, fan_out = sizes[li], sizes[li + 1]
        bound = 1.0 / (fan_in ** 0.5)
        last = li == n_layers - 1
        # Hidden layers stored as [in, out]; head stored PyTorch-style [out, in].
        w_shape = (fan_out, fan_in) if last else (fan_in, fan_out)
        b_shape = (fan_out, 1) if last else (1, fan_out)
        params[f"w{li + 1}"] = jax.random.uniform(
            keys[2 * li], w_shape, minval=-bound, maxval=bound, dtype=jnp.float32)
        params[f"b{li + 1}"] = jax.random.uniform(
            keys[2 * li + 1], b_shape, minval=-bound, maxval=bound, dtype=jnp.float32)
    return params


def reference_forward(x, params):
    h1 = jnp.maximum(x @ params["w1"] + params["b1"], 0.0)
    h2 = jnp.maximum(h1 @ params["w2"] + params["b2"], 0.0)
    return h2 @ params["w3"].T + params["b3"].T


if __name__ == "__main__":
    key = jax.random.PRNGKey(0)
    k_x, k_p = jax.random.split(key)

    batch = 200            # deliberately not a tile multiple -> exercises padding
    input_size = 32
    hidden_sizes = (64, 64)
    output_size = 1

    x = jax.random.normal(k_x, (batch, input_size), dtype=jnp.float32)
    params = init_params(k_p, input_size, hidden_sizes, output_size)

    out = net_forward(x, params)
    out = jax.block_until_ready(out)

    ref = reference_forward(x, params)
    assert out.shape == (batch, output_size)
    assert jnp.allclose(out, ref, atol=1e-4, rtol=1e-4), float(
        jnp.max(jnp.abs(out - ref)))

    print("KERNEL_OK")
</pallas_src>

<mosaic_0001>
module attributes {stable_mosaic.version = 11 : i64} {
  func.func @mlp_kernel(%arg0: i32, %arg1: memref<128x32xf32, #tpu.memory_space<vmem>>, %arg2: memref<32x64xf32, #tpu.memory_space<vmem>>, %arg3: memref<1x64xf32, #tpu.memory_space<vmem>>, %arg4: memref<64x64xf32, #tpu.memory_space<vmem>>, %arg5: memref<1x64xf32, #tpu.memory_space<vmem>>, %arg6: memref<1x64xf32, #tpu.memory_space<vmem>>, %arg7: memref<1x1xf32, #tpu.memory_space<vmem>>, %arg8: memref<1x128xf32, #tpu.memory_space<vmem>>) attributes {dimension_semantics = [#tpu.dimension_semantics<parallel>], iteration_bounds = array<i64: 2>, scalar_prefetch = 0 : i64, scratch_operands = 0 : i64, tpu.core_type = #tpu.core_type<tc>, window_params = [{transform_indices = @transform_0, window_bounds = array<i64: 128, 32>}, {pipeline_mode = #tpu.pipeline_mode<synchronous>, transform_indices = @transform_1, window_bounds = array<i64: 32, 64>}, {pipeline_mode = #tpu.pipeline_mode<synchronous>, transform_indices = @transform_2, window_bounds = array<i64: 1, 64>}, {pipeline_mode = #tpu.pipeline_mode<synchronous>, transform_indices = @transform_3, window_bounds = array<i64: 64, 64>}, {pipeline_mode = #tpu.pipeline_mode<synchronous>, transform_indices = @transform_4, window_bounds = array<i64: 1, 64>}, {pipeline_mode = #tpu.pipeline_mode<synchronous>, transform_indices = @transform_5, window_bounds = array<i64: 1, 64>}, {pipeline_mode = #tpu.pipeline_mode<synchronous>, transform_indices = @transform_6, window_bounds = array<i64: 1, 1>}, {transform_indices = @transform_7, window_bounds = array<i64: 1, 128>}]} {
    %c0 = arith.constant 0 : index
    %c0_0 = arith.constant 0 : index
    %0 = vector.load %arg1[%c0, %c0_0] : memref<128x32xf32, #tpu.memory_space<vmem>>, vector<128x32xf32>
    %c0_1 = arith.constant 0 : index
    %c0_2 = arith.constant 0 : index
    %1 = vector.load %arg2[%c0_1, %c0_2] : memref<32x64xf32, #tpu.memory_space<vmem>>, vector<32x64xf32>
    %cst = arith.constant dense<0.000000e+00> : vector<128x64xf32>
    %2 = tpu.matmul %0, %1, %cst {dimension_numbers = #tpu.dot_dimension_numbers<[1], [0], [0], [1], [0, 0, 1, 1], [], []>} : vector<128x32xf32>, vector<32x64xf32>, vector<128x64xf32> -> vector<128x64xf32>
    %c0_3 = arith.constant 0 : index
    %c0_4 = arith.constant 0 : index
    %3 = vector.load %arg3[%c0_3, %c0_4] : memref<1x64xf32, #tpu.memory_space<vmem>>, vector<1x64xf32>
    %4 = vector.broadcast %3 : vector<1x64xf32> to vector<128x64xf32>
    %5 = arith.addf %2, %4 : vector<128x64xf32>
    %cst_5 = arith.constant 0.000000e+00 : f32
    %6 = vector.broadcast %cst_5 : f32 to vector<128x64xf32>
    %7 = arith.maximumf %5, %6 : vector<128x64xf32>
    %c0_6 = arith.constant 0 : index
    %c0_7 = arith.constant 0 : index
    %8 = vector.load %arg4[%c0_6, %c0_7] : memref<64x64xf32, #tpu.memory_space<vmem>>, vector<64x64xf32>
    %cst_8 = arith.constant dense<0.000000e+00> : vector<128x64xf32>
    %9 = tpu.matmul %7, %8, %cst_8 {dimension_numbers = #tpu.dot_dimension_numbers<[1], [0], [0], [1], [0, 0, 1, 1], [], []>} : vector<128x64xf32>, vector<64x64xf32>, vector<128x64xf32> -> vector<128x64xf32>
    %c0_9 = arith.constant 0 : index
    %c0_10 = arith.constant 0 : index
    %10 = vector.load %arg5[%c0_9, %c0_10] : memref<1x64xf32, #tpu.memory_space<vmem>>, vector<1x64xf32>
    %11 = vector.broadcast %10 : vector<1x64xf32> to vector<128x64xf32>
    %12 = arith.addf %9, %11 : vector<128x64xf32>
    %cst_11 = arith.constant 0.000000e+00 : f32
    %13 = vector.broadcast %cst_11 : f32 to vector<128x64xf32>
    %14 = arith.maximumf %12, %13 : vector<128x64xf32>
    %c0_12 = arith.constant 0 : index
    %c0_13 = arith.constant 0 : index
    %15 = vector.load %arg6[%c0_12, %c0_13] : memref<1x64xf32, #tpu.memory_space<vmem>>, vector<1x64xf32>
    %cst_14 = arith.constant dense<0.000000e+00> : vector<1x128xf32>
    %16 = tpu.matmul %15, %14, %cst_14 {dimension_numbers = #tpu.dot_dimension_numbers<[1], [1], [0], [0], [0, 0, 1, 0], [], []>} : vector<1x64xf32>, vector<128x64xf32>, vector<1x128xf32> -> vector<1x128xf32>
    %c0_15 = arith.constant 0 : index
    %c0_16 = arith.constant 0 : index
    %17 = vector.load %arg7[%c0_15, %c0_16] : memref<1x1xf32, #tpu.memory_space<vmem>>, vector<1x1xf32>
    %18 = vector.broadcast %17 : vector<1x1xf32> to vector<1x128xf32>
    %19 = arith.addf %16, %18 : vector<1x128xf32>
    %c0_17 = arith.constant 0 : index
    %c0_18 = arith.constant 0 : index
    %20 = vector.load %arg8[%c0_17, %c0_18] : memref<1x128xf32, #tpu.memory_space<vmem>>, vector<1x128xf32>
    tpu.vector_store %arg8[%c0_17, %c0_18], %19 {strides = array<i32>} : memref<1x128xf32, #tpu.memory_space<vmem>>, vector<1x128xf32>,
    return
  }
  func.func @transform_0(%arg0: i32) -> (i32, i32) {
    %c0_i32 = arith.constant 0 : i32
    %c0_i32_0 = arith.constant 0 : i32
    return %arg0, %c0_i32 : i32, i32
  }
  func.func @transform_1(%arg0: i32) -> (i32, i32) {
    %c0_i32 = arith.constant 0 : i32
    %c0_i32_0 = arith.constant 0 : i32
    %c0_i32_1 = arith.constant 0 : i32
    return %c0_i32, %c0_i32_0 : i32, i32
  }
  func.func @transform_2(%arg0: i32) -> (i32, i32) {
    %c0_i32 = arith.constant 0 : i32
    %c0_i32_0 = arith.constant 0 : i32
    %c0_i32_1 = arith.constant 0 : i32
    return %c0_i32, %c0_i32_0 : i32, i32
  }
  func.func @transform_3(%arg0: i32) -> (i32, i32) {
    %c0_i32 = arith.constant 0 : i32
    %c0_i32_0 = arith.constant 0 : i32
    %c0_i32_1 = arith.constant 0 : i32
    return %c0_i32, %c0_i32_0 : i32, i32
  }
  func.func @transform_4(%arg0: i32) -> (i32, i32) {
    %c0_i32 = arith.constant 0 : i32
    %c0_i32_0 = arith.constant 0 : i32
    %c0_i32_1 = arith.constant 0 : i32
    return %c0_i32, %c0_i32_0 : i32, i32
  }
  func.func @transform_5(%arg0: i32) -> (i32, i32) {
    %c0_i32 = arith.constant 0 : i32
    %c0_i32_0 = arith.constant 0 : i32
    %c0_i32_1 = arith.constant 0 : i32
    return %c0_i32, %c0_i32_0 : i32, i32
  }
  func.func @transform_6(%arg0: i32) -> (i32, i32) {
    %c0_i32 = arith.constant 0 : i32
    %c0_i32_0 = arith.constant 0 : i32
    %c0_i32_1 = arith.constant 0 : i32
    return %c0_i32, %c0_i32_0 : i32, i32
  }
  func.func @transform_7(%arg0: i32) -> (i32, i32) {
    %c0_i32 = arith.constant 0 : i32
    %c0_i32_0 = arith.constant 0 : i32
    return %c0_i32, %arg0 : i32, i32
  }
}

</mosaic_0001>

<bundles_post_ra>
// kernel: net_forward.1
= control target key start
LH: loop header
LB: loop body
LE: loop exit
PB: predicated region body
PF: predicated region fallthrough
CT: control target
= control target key end

     0   :  { %s836_s26 = smov 0   ;;  %s991_s0 = inlined_call_operand.vmem [shape: f32[256,32], index: 0, kind: input, shape index: {}]   ;;  %s992_s1 = inlined_call_operand.vmem [shape: f32[32,64], index: 1, kind: input, shape index: {}]   ;;  %s993_s2 = inlined_call_operand.vmem [shape: f32[1,64], index: 2, kind: input, shape index: {}]   ;;  %s994_s3 = inlined_call_operand.vmem [shape: f32[64,64], index: 3, kind: input, shape index: {}]   ;;  %s995_s4 = inlined_call_operand.vmem [shape: f32[1,64], index: 4, kind: input, shape index: {}]   ;;  %s996_s5 = inlined_call_operand.vmem [shape: f32[1,64], index: 5, kind: input, shape index: {}]   ;;  %s997_s6 = inlined_call_operand.<no memory space> [shape: f32[1,1], index: 6, kind: input, shape index: {}]   ;;  %s998_s7 = inlined_call_operand.vmem [shape: f32[1,256], index: 7, kind: output, shape index: {}]  }
   0x1   :  { %v12_v0 = vstv %s997_s6 }
   0x2   :  { %13 = vst [vmem:[#allocation2] sm:$0x1] %v12_v0 }
   0x3 LB: > { %s842_s27 = sadd.s32 4294967295, %s790_s26   ;;  %p706_p0 = scmp.ge.s32.totalorder %s790_s26, 1  ;;  %s790_s26 = sphi %s836_s26, %s19_s26  }
   0x4   : > { %p240_p1 = scmp.lt.s32.totalorder %s790_s26, 3 }
   0x6   : > { %p241_p2 = pnand %p706_p0, %p240_p1 }
   0x7   : > { %s707_s8 = sshll.u32 (!%p241_p2), %s842_s27, 4  ;;  %p276_p4 = scmp.lt.s32.totalorder (!%p241_p2), %s842_s27, 1 }
   0x8   : > { %244 = sbr.rel (%p241_p2) target bundleno = 605 (0x25d), region = 48  ;;  %p271_p3 = scmp.lt.s32.totalorder (!%p241_p2), %s707_s8, 31 }
   0xd   : > { %v298_v1 = vld [vmem:[%s992_s1 + $0x18] sm:$0xff]  ;;  %v297_v2 = vld [vmem:[%s992_s1 + $0x10] sm:$0xff]  ;;  %v296_v3 = vld [vmem:[%s992_s1 + $0x8] sm:$0xff]  ;;  %s1000_s8 = smov (!%p271_p3, %s707_s8), 31  ;;  %vm303_vm0 = vcmask 261120   ;;  %vm445_vm1 = vcmask 523264  }
   0xe   : > { %364 = vmatpush.msra.mxu0 %v298_v1  ;;  %760 = vmatpush.msra.mxu3 %v298_v1  ;;  %v295_v4 = vld [vmem:[%s992_s1] sm:$0xff]  ;;  %s708_s13 = sshll.u32 %s1000_s8, 3  ;;  %v440_v13 = vld [vmem:[%s994_s3 + $0x38] sm:$0xff]  ;;  %v439_v14 = vld [vmem:[%s994_s3 + $0x30] sm:$0xff]  ;;  %s1002_s27 = smov (!%p276_p4, %s842_s27), 1 }
   0xf   : > { %s862_s16 = scalar_lea.vmem %s991_s0, %s708_s13  ;;  %502 = vmatpush.msra.mxu1 %v440_v13  ;;  %v438_v15 = vld [vmem:[%s994_s3 + $0x28] sm:$0xff]  ;;  %v437_v17 = vld [vmem:[%s994_s3 + $0x20] sm:$0xff]  ;;  %v436_v19 = vld [vmem:[%s994_s3 + $0x18] sm:$0xff]  ;;  %s278_s19 = scalar_lea.vmem %s998_s7, %s1002_s27 }
  0x10   : > { %365 = vmatpush.msra.mxu0 %v297_v2  ;;  %761 = vmatpush.msra.mxu3 %v297_v2  ;;  %v279_v5 = vld [vmem:[%s862_s16] sm:$0xff]  ;;  %v280_v6 = vld [vmem:[%s862_s16 + $0x8] sm:$0xff]  ;;  %v281_v7 = vld [vmem:[%s862_s16 + $0x10] sm:$0xff] }
  0x11   : > { %v282_v8 = vld [vmem:[%s862_s16 + $0x18] sm:$0xff]  ;;  %v283_v9 = vld [vmem:[%s862_s16 + $0x20] sm:$0xff]  ;;  %v284_v10 = vld [vmem:[%s862_s16 + $0x28] sm:$0xff]  ;;  %503 = vmatpush.msra.mxu1 %v439_v14 }
  0x12   : > { %366 = vmatpush.msra.mxu0 %v296_v3  ;;  %762 = vmatpush.msra.mxu3 %v296_v3  ;;  %v285_v11 = vld [vmem:[%s862_s16 + $0x30] sm:$0xff]  ;;  %v290_v12 = vld [vmem:[%s862_s16 + $0x58] sm:$0xff]  ;;  %v291_v18 = vld [vmem:[%s862_s16 + $0x60] sm:$0xff] }
  0x13   : > { %v286_v16 = vld [vmem:[%s862_s16 + $0x38] sm:$0xff]  ;;  %504 = vmatpush.msra.mxu1 %v438_v15  ;;  %v287_v20 = vld [vmem:[%s862_s16 + $0x40] sm:$0xff]  ;;  %v292_v21 = vld [vmem:[%s862_s16 + $0x68] sm:$0xff] }
  0x14   : > { %367 = vmatpush.msra.mxu0 %v295_v4  ;;  %763 = vmatpush.msra.mxu3 %v295_v4  ;;  %v288_v22 = vld [vmem:[%s862_s16 + $0x48] sm:$0xff]  ;;  %v293_v23 = vld [vmem:[%s862_s16 + $0x70] sm:$0xff]  ;;  %v294_v25 = vld [vmem:[%s862_s16 + $0x78] sm:$0xff] }
  0x15   : > { %709 = vmatmul.msk.f32.vlgmr.msra.gmra.mxu0 %vm303_vm0, %v279_v5  ;;  %720 = vmatmul.msk.f32.vlgmr.msra.gmra.mxu3 %vm303_vm0, %v290_v12  ;;  %v289_v24 = vld [vmem:[%s862_s16 + $0x50] sm:$0xff]  ;;  %v434_v27 = vld [vmem:[%s994_s3 + $0x8] sm:$0xff]  ;;  %v433_v28 = vld [vmem:[%s994_s3] sm:$0xff] }
  0x16   : > { %764 = vmatpush.msrb.mxu3 %v440_v13  ;;  %505 = vmatpush.msra.mxu1 %v437_v17  ;;  %v435_v26 = vld [vmem:[%s994_s3 + $0x10] sm:$0xff]  ;;  %v923_v29 = vld [vmem:[%s993_s2] ss:$0 sm:$0xff] }
  0x18   : > { %765 = vmatpush.msrb.mxu3 %v439_v14  ;;  %506 = vmatpush.msra.mxu1 %v436_v19 }
  0x1a   : > { %766 = vmatpush.msrb.mxu3 %v438_v15  ;;  %507 = vmatpush.msra.mxu1 %v435_v26 }
  0x1c   : > { %767 = vmatpush.msrb.mxu3 %v437_v17  ;;  %508 = vmatpush.msra.mxu1 %v434_v27 }
  0x1d   : > { %710 = vmatmul.msk.f32.gmra.mxu0 %vm303_vm0, %v280_v6  ;;  %721 = vmatmul.msk.f32.gmra.mxu3 %vm303_vm0, %v291_v18 }
  0x1e   : > { %768 = vmatpush.msrb.mxu3 %v436_v19  ;;  %509 = vmatpush.msra.mxu1 %v433_v28 }
  0x20   : > { %769 = vmatpush.msrb.mxu3 %v435_v26  ;;  %v783_v26 = vld [vmem:[%s995_s4] ss:$0 sm:$0xff] }
  0x22   : > { %770 = vmatpush.msrb.mxu3 %v434_v27 }
  0x24   : > { %771 = vmatpush.msrb.mxu3 %v433_v28 }
  0x25   : > { %711 = vmatmul.msk.f32.gmra.mxu0 %vm303_vm0, %v281_v7  ;;  %722 = vmatmul.msk.f32.gmra.mxu3 %vm303_vm0, %v292_v21 }
  0x2d   : > { %712 = vmatmul.msk.f32.gmra.mxu0 %vm303_vm0, %v282_v8  ;;  %723 = vmatmul.msk.f32.gmra.mxu3 %vm303_vm0, %v293_v23 }
  0x35   : > { %713 = vmatmul.msk.f32.gmra.mxu0 %vm303_vm0, %v283_v9  ;;  %724 = vmatmul.msk.f32.gmra.mxu3 %vm303_vm0, %v294_v25 }
  0x3d   : > { %714 = vmatmul.msk.f32.gmra.mxu0 %vm303_vm0, %v284_v10 }
  0x45   : > { %715 = vmatmul.msk.f32.gmra.mxu0 %vm303_vm0, %v285_v11 }
  0x4d   : > { %716 = vmatmul.msk.f32.gmra.mxu0 %vm303_vm0, %v286_v16 }
  0x55   : > { %717 = vmatmul.msk.f32.gmra.mxu0 %vm303_vm0, %v287_v20 }
  0x5d   : > { %718 = vmatmul.msk.f32.gmra.mxu0 %vm303_vm0, %v288_v22 }
  0x65   : > { %719 = vmatmul.msk.f32.gmra.mxu0 %vm303_vm0, %v289_v24 }
  0x92   : > { %v369_v30 = vpop.f32.mrf.mxu0 }
  0x93   : > { %v370_v31 = vadd.f32 %v923_v29, %v369_v30 }
  0x95   : > { %v417_v32 = vmax.f32 %v370_v31, 0.0 }
  0x97   : > { %725 = vmatmul.msk.f32.vlgmr.msra.gmra.mxu1 %vm445_vm1, %v417_v32 }
  0x98   : > { %v402_v59 = vpop.f32.mrf.mxu3 }
  0x99   : > { %v403_v1 = vadd.f32 %v923_v29, %v402_v59 }
  0x9a   : > { %v372_v33 = vpop.f32.mrf.mxu0 }
  0x9b   : > { %v373_v34 = vadd.f32 %v923_v29, %v372_v33  ;;  %v428_v2 = vmax.f32 %v403_v1, 0.0  ;;  %v575_v1 = vld [vmem:[%s996_s5] sm:$0x1] }
  0x9d   : > { %v418_v35 = vmax.f32 %v373_v34, 0.0 }
  0x9f   : > { %726 = vmatmul.msk.f32.gmra.mxu1 %vm445_vm1, %v418_v35 }
  0xa0   : > { %v405_v0 = vpop.f32.mrf.mxu3 }
  0xa1   : > { %v406_v3 = vadd.f32 %v923_v29, %v405_v0 }
  0xa2   : > { %v375_v36 = vpop.f32.mrf.mxu0 }
  0xa3   : > { %v376_v37 = vadd.f32 %v923_v29, %v375_v36  ;;  %v429_v5 = vmax.f32 %v406_v3, 0.0 }
  0xa5   : > { %v419_v38 = vmax.f32 %v376_v37, 0.0 }
  0xa7   : > { %727 = vmatmul.msk.f32.gmra.mxu1 %vm445_vm1, %v419_v38 }
  0xa8   : > { %v408_v4 = vpop.f32.mrf.mxu3 }
  0xa9   : > { %v409_v6 = vadd.f32 %v923_v29, %v408_v4 }
  0xaa   : > { %v378_v39 = vpop.f32.mrf.mxu0 }
  0xab   : > { %v379_v40 = vadd.f32 %v923_v29, %v378_v39  ;;  %v430_v8 = vmax.f32 %v409_v6, 0.0 }
  0xad   : > { %v420_v41 = vmax.f32 %v379_v40, 0.0 }
  0xaf   : > { %728 = vmatmul.msk.f32.gmra.mxu1 %vm445_vm1, %v420_v41 }
  0xb0   : > { %v411_v7 = vpop.f32.mrf.mxu3 }
  0xb1   : > { %v412_v9 = vadd.f32 %v923_v29, %v411_v7 }
  0xb2   : > { %v381_v42 = vpop.f32.mrf.mxu0 }
  0xb3   : > { %v382_v43 = vadd.f32 %v923_v29, %v381_v42  ;;  %v431_v10 = vmax.f32 %v412_v9, 0.0 }
  0xb5   : > { %v421_v44 = vmax.f32 %v382_v43, 0.0 }
  0xb7   : > { %729 = vmatmul.msk.f32.gmra.mxu1 %vm445_vm1, %v421_v44 }
  0xb8   : > { %v414_v11 = vpop.f32.mrf.mxu3 }
  0xb9   : > { %v415_v12 = vadd.f32 %v923_v29, %v414_v11 }
  0xba   : > { %v384_v45 = vpop.f32.mrf.mxu0 }
  0xbb   : > { %v385_v46 = vadd.f32 %v923_v29, %v384_v45  ;;  %v432_v13 = vmax.f32 %v415_v12, 0.0 }
  0xbd   : > { %v422_v47 = vmax.f32 %v385_v46, 0.0 }
  0xbf   : > { %730 = vmatmul.msk.f32.gmra.mxu1 %vm445_vm1, %v422_v47 }
  0xc2   : > { %v387_v48 = vpop.f32.mrf.mxu0 }
  0xc3   : > { %v388_v49 = vadd.f32 %v923_v29, %v387_v48 }
  0xc5   : > { %v423_v50 = vmax.f32 %v388_v49, 0.0 }
  0xc7   : > { %731 = vmatmul.msk.f32.gmra.mxu1 %vm445_vm1, %v423_v50  ;;  %v576_v50 = vld [vmem:[#allocation2] sm:$0x1] }
  0xca   : > { %v390_v51 = vpop.f32.mrf.mxu0 }
  0xcb   : > { %v391_v52 = vadd.f32 %v923_v29, %v390_v51  ;;  %v792_v51 = vmov 0  }
  0xcc   : > { %781 = vset.pattern.permute.xlu0 %v792_v51 }
  0xcd   : > { %v424_v53 = vmax.f32 %v391_v52, 0.0  ;;  %579 = vperm.xlu0 %781, %v576_v50  }
  0xcf   : > { %732 = vmatmul.msk.f32.gmra.mxu1 %vm445_vm1, %v424_v53 }
  0xd2   : > { %v393_v54 = vpop.f32.mrf.mxu0 }
  0xd3   : > { %v394_v55 = vadd.f32 %v923_v29, %v393_v54 }
  0xd5   : > { %v425_v56 = vmax.f32 %v394_v55, 0.0 }
  0xd7   : > { %733 = vmatmul.msk.f32.gmra.mxu1 %vm445_vm1, %v425_v56 }
  0xda   : > { %v396_v57 = vpop.f32.mrf.mxu0 }
  0xdb   : > { %v397_v58 = vadd.f32 %v923_v29, %v396_v57 }
  0xdd   : > { %v426_v60 = vmax.f32 %v397_v58, 0.0 }
  0xdf   : > { %734 = vmatmul.msk.f32.gmra.mxu1 %vm445_vm1, %v426_v60 }
  0xe2   : > { %v399_v61 = vpop.f32.mrf.mxu0 }
  0xe3   : > { %v400_v62 = vadd.f32 %v923_v29, %v399_v61 }
  0xe5   : > { %v427_v63 = vmax.f32 %v400_v62, 0.0 }
  0xe7   : > { %735 = vmatmul.msk.f32.vlgmr.msrb.gmra.mxu3 %vm445_vm1, %v427_v63 }
  0xef   : > { %736 = vmatmul.msk.f32.gmra.mxu3 %vm445_vm1, %v428_v2 }
  0xf7   : > { %737 = vmatmul.msk.f32.gmra.mxu3 %vm445_vm1, %v429_v5 }
  0xff   : > { %738 = vmatmul.msk.f32.gmra.mxu3 %vm445_vm1, %v430_v8 }
 0x107   : > { %739 = vmatmul.msk.f32.gmra.mxu3 %vm445_vm1, %v431_v10 }
 0x10f   : > { %740 = vmatmul.msk.f32.gmra.mxu3 %vm445_vm1, %v432_v13 }
 0x114   : > { %v957_v14 = vpop.f32.mrf.mxu1 }
 0x115   : > { %v512_v62 = vadd.f32 %v783_v26, %v957_v14 }
 0x117   : > { %v559_v0 = vmax.f32 %v512_v62, 0.0 }
 0x11c   : > { %v514_v15 = vpop.f32.mrf.mxu1 }
 0x11d   : > { %v515_v60 = vadd.f32 %v783_v26, %v514_v15 }
 0x11f   : > { %v560_v63 = vmax.f32 %v515_v60, 0.0 }
 0x124   : > { %v517_v16 = vpop.f32.mrf.mxu1 }
 0x125   : > { %v518_v58 = vadd.f32 %v783_v26, %v517_v16 }
 0x127   : > { %v561_v61 = vmax.f32 %v518_v58, 0.0 }
 0x12c   : > { %v520_v17 = vpop.f32.mrf.mxu1 }
 0x12d   : > { %v521_v56 = vadd.f32 %v783_v26, %v520_v17 }
 0x12f   : > { %v562_v59 = vmax.f32 %v521_v56, 0.0 }
 0x134   : > { %v523_v20 = vpop.f32.mrf.mxu1 }
 0x135   : > { %v524_v54 = vadd.f32 %v783_v26, %v523_v20 }
 0x137   : > { %v563_v57 = vmax.f32 %v524_v54, 0.0 }
 0x13c   : > { %v526_v22 = vpop.f32.mrf.mxu1 }
 0x13d   : > { %v527_v52 = vadd.f32 %v783_v26, %v526_v22 }
 0x13f   : > { %v564_v55 = vmax.f32 %v527_v52, 0.0  ;;  %v580_v2 = vpop.permute.xlu0 %579 }
 0x140   : > { %v582_v3 = vperm.slane %v580_v2, 0 }
 0x144   : > { %v529_v24 = vpop.f32.mrf.mxu1 }
 0x145   : > { %v530_v48 = vadd.f32 %v783_v26, %v529_v24 }
 0x147   : > { %v565_v53 = vmax.f32 %v530_v48, 0.0 }
 0x14c   : > { %v532_v27 = vpop.f32.mrf.mxu1 }
 0x14d   : > { %v533_v46 = vadd.f32 %v783_v26, %v532_v27 }
 0x14f   : > { %v566_v49 = vmax.f32 %v533_v46, 0.0 }
 0x154   : > { %v535_v34 = vpop.f32.mrf.mxu1 }
 0x155   : > { %v536_v44 = vadd.f32 %v783_v26, %v535_v34 }
 0x157   : > { %v567_v47 = vmax.f32 %v536_v44, 0.0 }
 0x15c   : > { %v538_v41 = vpop.f32.mrf.mxu1 }
 0x15d   : > { %v539_v42 = vadd.f32 %v783_v26, %v538_v41 }
 0x15f   : > { %v568_v45 = vmax.f32 %v539_v42, 0.0 }
 0x16a   : > { %v541_v18 = vpop.f32.mrf.mxu3 }
 0x16b   : > { %v542_v39 = vadd.f32 %v783_v26, %v541_v18 }
 0x16d   : > { %v569_v43 = vmax.f32 %v542_v39, 0.0 }
 0x172   : > { %v544_v19 = vpop.f32.mrf.mxu3 }
 0x173   : > { %v545_v37 = vadd.f32 %v783_v26, %v544_v19 }
 0x175   : > { %v570_v40 = vmax.f32 %v545_v37, 0.0 }
 0x17a   : > { %v547_v21 = vpop.f32.mrf.mxu3 }
 0x17b   : > { %v548_v35 = vadd.f32 %v783_v26, %v547_v21 }
 0x17d   : > { %v571_v38 = vmax.f32 %v548_v35, 0.0 }
 0x182   : > { %v550_v23 = vpop.f32.mrf.mxu3 }
 0x183   : > { %v551_v32 = vadd.f32 %v783_v26, %v550_v23 }
 0x185   : > { %v572_v36 = vmax.f32 %v551_v32, 0.0 }
 0x18a   : > { %v553_v25 = vpop.f32.mrf.mxu3 }
 0x18b   : > { %v554_v30 = vadd.f32 %v783_v26, %v553_v25 }
 0x18d   : > { %v573_v33 = vmax.f32 %v554_v30, 0.0 }
 0x192   : > { %v556_v28 = vpop.f32.mrf.mxu3 }
 0x193   : > { %v557_v29 = vadd.f32 %v783_v26, %v556_v28 }
 0x195   : > { %v574_v31 = vmax.f32 %v557_v29, 0.0 }
 0x197   : > { %741 = vmatpush.xpose.msk.msra.mxu2 %vm445_vm1, %v574_v31 }
 0x19b   : > { %742 = vmatpush.xpose.msk.msra.mxu2 %vm445_vm1, %v573_v33 }
 0x19f   : > { %743 = vmatpush.xpose.msk.msra.mxu2 %vm445_vm1, %v572_v36 }
 0x1a3   : > { %744 = vmatpush.xpose.msk.msra.mxu2 %vm445_vm1, %v571_v38 }
 0x1a7   : > { %745 = vmatpush.xpose.msk.msra.mxu2 %vm445_vm1, %v570_v40 }
 0x1ab   : > { %746 = vmatpush.xpose.msk.msra.mxu2 %vm445_vm1, %v569_v43 }
 0x1af   : > { %747 = vmatpush.xpose.msk.msra.mxu2 %vm445_vm1, %v568_v45 }
 0x1b3   : > { %748 = vmatpush.xpose.msk.msra.mxu2 %vm445_vm1, %v567_v47 }
 0x1b7   : > { %749 = vmatpush.xpose.msk.msra.mxu2 %vm445_vm1, %v566_v49 }
 0x1bb   : > { %750 = vmatpush.xpose.msk.msra.mxu2 %vm445_vm1, %v565_v53 }
 0x1bf   : > { %751 = vmatpush.xpose.msk.msra.mxu2 %vm445_vm1, %v564_v55 }
 0x1c3   : > { %752 = vmatpush.xpose.msk.msra.mxu2 %vm445_vm1, %v563_v57 }
 0x1c7   : > { %753 = vmatpush.xpose.msk.msra.mxu2 %vm445_vm1, %v562_v59 }
 0x1cb   : > { %754 = vmatpush.xpose.msk.msra.mxu2 %vm445_vm1, %v561_v61 }
 0x1cf   : > { %755 = vmatpush.xpose.msk.msra.mxu2 %vm445_vm1, %v560_v63 }
 0x1d3   : > { %756 = vmatpush.xpose.msk.msra.mxu2 %vm445_vm1, %v559_v0 }
 0x1d6   : > { %757 = vmatmul.msk.f32.vlgmr.msra.gmra.mxu2 %vm445_vm1, %v575_v1 }
 0x259   : > { %v651_v4 = vpop.f32.mrf.mxu2 }
 0x25a   : > { %v652_v5 = vadd.f32 %v651_v4, %v582_v3 }
 0x25c   : > { %654 = vst [vmem:[%s278_s19] sm:$0x1] %v652_v5 }
 0x25d PF: > { %s19_s26 = sadd.s32 1, %s790_s26  }
 0x25e   : > { %p16_p5 = scmp.ge.s32.totalorder %s19_s26, 4  }
 0x260   :  { %18 = sbr.rel (!%p16_p5) target bundleno = 3 (0x3), region = 78 }

</bundles_post_ra>
